<compile_context>
chip_gen: v6e
topology: v6e:2x2x1
jax: 0.10.0
libtpu: 0.0.40
codegen_flags: <defaults>
</compile_context>

<pallas_src>
import functools
import math

import jax
import jax.numpy as jnp
from jax.experimental import pallas as pl
from jax.experimental.pallas import tpu as pltpu

DTYPE = jnp.float32
BF16 = jnp.bfloat16
NEG_INF = -1e9
NEG_BIG = -1e30
_VMEM_LIMIT = 64 * 1024 * 1024


# ----------------------------------------------------------------------------
# small tiling helpers
# ----------------------------------------------------------------------------
def _round_up(v, m):
    return ((v + m - 1) // m) * m


def _tile(dim, cap):
    """Return (tile, padded_dim).  cap is a multiple of 128 (lane) / 16 (bf16 sublane)."""
    if dim <= cap:
        return dim, dim            # full-dim block: always legal, no padding
    return cap, _round_up(dim, cap)


def _pad2(x, r, c):
    pr, pc = r - x.shape[0], c - x.shape[1]
    if pr == 0 and pc == 0:
        return x
    return jnp.pad(x, ((0, pr), (0, pc)))


# ----------------------------------------------------------------------------
# Tiled linear (+ fused epilogue activation), bf16 MXU path, f32 accumulator
# ----------------------------------------------------------------------------
def _linear_kernel(x_ref, w_ref, b_ref, o_ref, acc_ref, *, act):
    k = pl.program_id(2)

    @pl.when(k == 0)
    def _():
        acc_ref[...] = jnp.zeros_like(acc_ref)

    acc_ref[...] += jnp.dot(x_ref[...].astype(BF16), w_ref[...],
                            preferred_element_type=jnp.float32)

    @pl.when(k == pl.num_programs(2) - 1)
    def _():
        r = acc_ref[...] + b_ref[...]
        if act == "gelu":
            r = jax.nn.gelu(r)
        elif act == "relu":
            r = jnp.maximum(r, 0.0)
        elif act == "sigmoid":
            r = jax.nn.sigmoid(r)
        o_ref[...] = r.astype(o_ref.dtype)


def linear(x, w, b, act=None, out_dtype=DTYPE):
    """x: (..., K) @ w: (K, N) + b: (N,) -> act(...).  Weights go to bf16, acc is f32."""
    shp = x.shape
    K = shp[-1]
    N = w.shape[1]
    x2 = x.reshape(-1, K)
    M = x2.shape[0]

    tm, Mp = _tile(M, 512)
    tk, Kp = _tile(K, 512)
    tn, Np = _tile(N, 1024)

    # TODO(synk): under jit, pre-pad/pre-cast the (constant) weights once outside the step.
    x2 = _pad2(x2, Mp, Kp)
    wp = _pad2(w, Kp, Np).astype(BF16)
    bp = _pad2(b.reshape(1, N), 1, Np).astype(jnp.float32)

    out = pl.pallas_call(
        functools.partial(_linear_kernel, act=act),
        out_shape=jax.ShapeDtypeStruct((Mp, Np), out_dtype),
        grid=(Mp // tm, Np // tn, Kp // tk),
        in_specs=[
            pl.BlockSpec((tm, tk), lambda i, j, k: (i, k)),
            pl.BlockSpec((tk, tn), lambda i, j, k: (k, j)),
            pl.BlockSpec((1, tn), lambda i, j, k: (0, j)),
        ],
        out_specs=pl.BlockSpec((tm, tn), lambda i, j, k: (i, j)),
        scratch_shapes=[pltpu.VMEM((tm, tn), jnp.float32)],
        compiler_params=pltpu.CompilerParams(
            dimension_semantics=("parallel", "parallel", "arbitrary"),
            vmem_limit_bytes=_VMEM_LIMIT),
    )(x2, wp, bp)
    return out[:M, :N].reshape(shp[:-1] + (N,))


# ----------------------------------------------------------------------------
# Fused (gated) residual-add + LayerNorm, row-tiled.
# Computes LayerNorm(coef_x * x + coef_y * y); gate coefficients are fused in-kernel
# as (1, D) broadcast rows so no extra full-tensor XLA elementwise pass is needed.
# ----------------------------------------------------------------------------
def _add_ln_kernel(x_ref, y_ref, ax_ref, ay_ref, g_ref, b_ref, o_ref):
    x = (x_ref[...].astype(jnp.float32) * ax_ref[...]
         + y_ref[...].astype(jnp.float32) * ay_ref[...])
    mu = jnp.mean(x, axis=-1, keepdims=True)
    var = jnp.mean((x - mu) * (x - mu), axis=-1, keepdims=True)
    y = (x - mu) * jax.lax.rsqrt(var + 1e-5)
    o_ref[...] = (y * g_ref[...] + b_ref[...]).astype(o_ref.dtype)


def add_layer_norm(x, y, gamma, beta, coef_x=None, coef_y=None):
    shp = x.shape
    D = shp[-1]
    x2 = x.reshape(-1, D)
    y2 = y.reshape(-1, D)
    M = x2.shape[0]
    tm, Mp = _tile(M, 512)
    x2 = _pad2(x2, Mp, D)
    y2 = _pad2(y2, Mp, D)
    ones = jnp.ones((1, D), DTYPE)
    ax = ones if coef_x is None else jnp.full((1, D), coef_x, DTYPE)
    ay = ones if coef_y is None else jnp.full((1, D), coef_y, DTYPE)
    out = pl.pallas_call(
        _add_ln_kernel,
        out_shape=jax.ShapeDtypeStruct((Mp, D), DTYPE),
        grid=(Mp // tm,),
        in_specs=[
            pl.BlockSpec((tm, D), lambda i: (i, 0)),
            pl.BlockSpec((tm, D), lambda i: (i, 0)),
            pl.BlockSpec((1, D), lambda i: (0, 0)),
            pl.BlockSpec((1, D), lambda i: (0, 0)),
            pl.BlockSpec((1, D), lambda i: (0, 0)),
            pl.BlockSpec((1, D), lambda i: (0, 0)),
        ],
        out_specs=pl.BlockSpec((tm, D), lambda i: (i, 0)),
        compiler_params=pltpu.CompilerParams(dimension_semantics=("parallel",),
                                             vmem_limit_bytes=_VMEM_LIMIT),
    )(x2, y2, ax, ay, gamma.reshape(1, D), beta.reshape(1, D))
    return out[:M].reshape(shp)


# ----------------------------------------------------------------------------
# Fused FFN: linear -> ReLU -> linear (FF intermediate stays in VMEM, bf16 MXU)
# ----------------------------------------------------------------------------
def _ffn_kernel(x_ref, w1_ref, b1_ref, w2_ref, b2_ref, o_ref, acc_ref):
    f = pl.program_id(1)

    @pl.when(f == 0)
    def _():
        acc_ref[...] = jnp.zeros_like(acc_ref)

    h = jnp.dot(x_ref[...].astype(BF16), w1_ref[...],
                preferred_element_type=jnp.float32) + b1_ref[...]
    h = jnp.maximum(h, 0.0)
    acc_ref[...] += jnp.dot(h.astype(BF16), w2_ref[...],
                            preferred_element_type=jnp.float32)

    @pl.when(f == pl.num_programs(1) - 1)
    def _():
        o_ref[...] = (acc_ref[...] + b2_ref[...]).astype(o_ref.dtype)


def ffn(x, w1, b1, w2, b2):
    shp = x.shape
    D = shp[-1]
    FFd = w1.shape[1]
    x2 = x.reshape(-1, D)
    M = x2.shape[0]
    tm, Mp = _tile(M, 512)
    tf, FFp = _tile(FFd, 512)
    x2 = _pad2(x2, Mp, D)
    w1p = _pad2(w1, D, FFp).astype(BF16)
    b1p = _pad2(b1.reshape(1, FFd), 1, FFp)
    w2p = _pad2(w2, FFp, D).astype(BF16)
    b2p = b2.reshape(1, D)
    out = pl.pallas_call(
        _ffn_kernel,
        out_shape=jax.ShapeDtypeStruct((Mp, D), DTYPE),
        grid=(Mp // tm, FFp // tf),
        in_specs=[
            pl.BlockSpec((tm, D), lambda i, f: (i, 0)),
            pl.BlockSpec((D, tf), lambda i, f: (0, f)),
            pl.BlockSpec((1, tf), lambda i, f: (0, f)),
            pl.BlockSpec((tf, D), lambda i, f: (f, 0)),
            pl.BlockSpec((1, D), lambda i, f: (0, 0)),
        ],
        out_specs=pl.BlockSpec((tm, D), lambda i, f: (i, 0)),
        scratch_shapes=[pltpu.VMEM((tm, D), jnp.float32)],
        compiler_params=pltpu.CompilerParams(
            dimension_semantics=("parallel", "arbitrary"),
            vmem_limit_bytes=_VMEM_LIMIT),
    )(x2, w1p, b1p, w2p, b2p)
    return out[:M].reshape(shp)


# ----------------------------------------------------------------------------
# Flash attention (shared by encoder self-attn, decoder self-attn, cross-attn).
# grid = (B, q_tiles, kv_tiles); online softmax held in VMEM scratch; heads looped
# in-kernel, each head's PV result accumulated into a (tq, D) scratch (no concat).
# Masks arrive as int8 (1 = attend) or are generated in-kernel (causal).
# ----------------------------------------------------------------------------
def _flash_attn_kernel(*refs, nhead, scale, mask_mode):
    if mask_mode == "causal":
        q_ref, k_ref, v_ref, o_ref, m_sc, l_sc, acc_sc = refs
        mask_ref = None
    else:
        mask_ref, q_ref, k_ref, v_ref, o_ref, m_sc, l_sc, acc_sc = refs

    qi = pl.program_id(1)
    ki = pl.program_id(2)

    @pl.when(ki == 0)
    def _():
        m_sc[...] = jnp.full_like(m_sc, NEG_BIG)
        l_sc[...] = jnp.zeros_like(l_sc)
        acc_sc[...] = jnp.zeros_like(acc_sc)

    q = q_ref[0]                                   # (tq, D)  bf16
    k = k_ref[0]                                   # (ts, D)  bf16
    v = v_ref[0]                                   # (ts, D)  bf16
    tq, D = q.shape
    ts = k.shape[0]
    Dh = D // nhead

    # fold 1/sqrt(Dh) into q once (not into every (tq, ts) score matrix)
    qs = (q.astype(jnp.float32) * scale).astype(BF16)

    if mask_mode == "causal":
        row = qi * tq + jax.lax.broadcasted_iota(jnp.int32, (tq, ts), 0)
        col = ki * ts + jax.lax.broadcasted_iota(jnp.int32, (tq, ts), 1)
        bias = jnp.where(row >= col, 0.0, NEG_INF)
    else:
        bias = jnp.where(mask_ref[0] != 0, 0.0, NEG_INF)   # (tq, ts) or (1, ts)

    for h in range(nhead):
        sl = slice(h * Dh, (h + 1) * Dh)
        s = jax.lax.dot_general(qs[:, sl], k[:, sl], (((1,), (1,)), ((), ())),
                                preferred_element_type=jnp.float32)
        s = s + bias
        m_prev = m_sc[h]                                               # (tq, 1)
        m_new = jnp.maximum(m_prev, jnp.max(s, axis=-1, keepdims=True))
        a = jnp.exp(m_prev - m_new)
        p = jnp.exp(s - m_new)
        l_sc[h] = a * l_sc[h] + jnp.sum(p, axis=-1, keepdims=True)
        acc_sc[:, sl] = a * acc_sc[:, sl] + jnp.dot(
            p.astype(BF16), v[:, sl], preferred_element_type=jnp.float32)
        m_sc[h] = m_new

    @pl.when(ki == pl.num_programs(2) - 1)
    def _():
        for h in range(nhead):
            sl = slice(h * Dh, (h + 1) * Dh)
            acc_sc[:, sl] = acc_sc[:, sl] / l_sc[h]        # exact divide, once per row
        o_ref[0] = acc_sc[...].astype(o_ref.dtype)


def _flash_call(mask_arr, mask_spec, mask_mode, q_arr, k_arr, v_arr,
                q_spec, k_spec, v_spec, *, grid, tq, Lq, D, nhead, scale, out_dtype):
    in_specs = []
    args = []
    if mask_mode != "causal":
        in_specs.append(mask_spec)
        args.append(mask_arr)
    in_specs += [q_spec, k_spec, v_spec]
    args += [q_arr, k_arr, v_arr]
    return pl.pallas_call(
        functools.partial(_flash_attn_kernel, nhead=nhead, scale=scale, mask_mode=mask_mode),
        out_shape=jax.ShapeDtypeStruct((grid[0], Lq, D), out_dtype),
        grid=grid,
        in_specs=in_specs,
        out_specs=pl.BlockSpec((1, tq, D), lambda b, qi, ki: (b, qi, 0)),
        scratch_shapes=[pltpu.VMEM((nhead, tq, 1), jnp.float32),
                        pltpu.VMEM((nhead, tq, 1), jnp.float32),
                        pltpu.VMEM((tq, D), jnp.float32)],
        compiler_params=pltpu.CompilerParams(
            dimension_semantics=("parallel", "parallel", "arbitrary"),
            vmem_limit_bytes=_VMEM_LIMIT),
    )(*args)


def flash_self_attention(qkv, nhead, *, mask_i8=None, causal=False,
                         out_dtype=BF16, seq_cap=256):
    """qkv: (B, L, 3D) bf16; mask_i8: (B, L, L) int8 (1 = attend) or None with causal."""
    B, L, D3 = qkv.shape
    D = D3 // 3
    t, Lp = _tile(L, seq_cap)
    if Lp != L:
        qkv = jnp.pad(qkv, ((0, 0), (0, Lp - L), (0, 0)))
        if mask_i8 is not None:
            mask_i8 = jnp.pad(mask_i8, ((0, 0), (0, Lp - L), (0, Lp - L)))
    nb = Lp // t

    if D % 128 == 0:
        # three lane-aligned views of the fused (B, L, 3D) projection — zero extra copies
        q_arr, k_arr, v_arr = qkv, qkv, qkv
        k_col, v_col = 1, 2
    else:
        # fallback: split so every block's lane dim equals the full array dim
        q_arr = qkv[..., :D]
        k_arr = qkv[..., D:2 * D]
        v_arr = qkv[..., 2 * D:]
        k_col, v_col = 0, 0

    q_spec = pl.BlockSpec((1, t, D), lambda b, qi, ki: (b, qi, 0))
    k_spec = pl.BlockSpec((1, t, D), lambda b, qi, ki, c=k_col: (b, ki, c))
    v_spec = pl.BlockSpec((1, t, D), lambda b, qi, ki, c=v_col: (b, ki, c))

    if causal:
        mask_mode, mask_arr, mask_spec = "causal", None, None
    else:
        mask_mode = "dense"
        mask_arr = mask_i8
        mask_spec = pl.BlockSpec((1, t, t), lambda b, qi, ki: (b, qi, ki))

    out = _flash_call(mask_arr, mask_spec, mask_mode, q_arr, k_arr, v_arr,
                      q_spec, k_spec, v_spec, grid=(B, nb, nb), tq=t, Lq=Lp,
                      D=D, nhead=nhead, scale=1.0 / math.sqrt(D // nhead),
                      out_dtype=out_dtype)
    return out[:, :L] if Lp != L else out


def flash_cross_attention(q, kv, key_i8, nhead, *, out_dtype=BF16,
                          tq_cap=256, ts_cap=256):
    """q: (B, T, D) bf16; kv: (B, S, 2D) bf16; key_i8: (B, 1, S) int8 (1 = valid key)."""
    B, T, D = q.shape
    S = kv.shape[1]
    tq, Tp = _tile(T, tq_cap)
    ts, Sp = _tile(S, ts_cap)
    if Tp != T:
        q = jnp.pad(q, ((0, 0), (0, Tp - T), (0, 0)))
    if Sp != S:
        kv = jnp.pad(kv, ((0, 0), (0, Sp - S), (0, 0)))
        key_i8 = jnp.pad(key_i8, ((0, 0), (0, 0), (0, Sp - S)))

    if D % 128 == 0:
        k_arr, v_arr = kv, kv
        k_col, v_col = 0, 1
    else:
        k_arr = kv[..., :D]
        v_arr = kv[..., D:]
        k_col, v_col = 0, 0

    q_spec = pl.BlockSpec((1, tq, D), lambda b, qi, ki: (b, qi, 0))
    k_spec = pl.BlockSpec((1, ts, D), lambda b, qi, ki, c=k_col: (b, ki, c))
    v_spec = pl.BlockSpec((1, ts, D), lambda b, qi, ki, c=v_col: (b, ki, c))
    mask_spec = pl.BlockSpec((1, 1, ts), lambda b, qi, ki: (b, 0, ki))

    out = _flash_call(key_i8, mask_spec, "key", q, k_arr, v_arr,
                      q_spec, k_spec, v_spec, grid=(B, Tp // tq, Sp // ts),
                      tq=tq, Lq=Tp, D=D, nhead=nhead,
                      scale=1.0 / math.sqrt(D // nhead), out_dtype=out_dtype)
    return out[:, :T] if Tp != T else out


# ----------------------------------------------------------------------------
# Fused copy-attention: gate(sigmoid) + softmax + copy-idx-mask reduction.
# The copy projection and the copy gate share one lane-dense matmul; the kernel
# slices q = cg[:, :D] and the gate logit = cg[:, D].
# ----------------------------------------------------------------------------
def _copy_kernel(cg_ref, mem_ref, km_ref, idx_ref, oc_ref, og_ref, *, scale, d):
    cg = cg_ref[0].astype(jnp.float32)                   # (T, D+1)
    q = (cg[:, :d] * scale).astype(BF16)                 # (T, D)
    gate = jax.nn.sigmoid(cg[:, d:d + 1])                # (T, 1)
    mem = mem_ref[0]                                     # (S, D) bf16
    s = jax.lax.dot_general(q, mem, (((1,), (1,)), ((), ())),
                            preferred_element_type=jnp.float32)       # (T, S)
    s = s + jnp.where(km_ref[0] != 0, 0.0, NEG_INF)
    s = s - jnp.max(s, axis=-1, keepdims=True)
    p = jnp.exp(s)
    p = p / jnp.sum(p, axis=-1, keepdims=True)
    copy_p = jnp.sum(jnp.where(idx_ref[0] != 0, p, 0.0), axis=-1, keepdims=True)
    oc_ref[0] = (gate * copy_p).astype(oc_ref.dtype)
    og_ref[0] = gate.astype(og_ref.dtype)


def copy_attention(cg, memory_bf, key_i8, idx_i8):
    """cg: (B,T,D+1) f32; memory: (B,S,D) bf16; key/idx masks int8 -> (p_copy*copy_prob, p_copy)."""
    # TODO(synk): flash-tile over S for very long source sequences.
    B, T, D1 = cg.shape
    S, D = memory_bf.shape[1], memory_bf.shape[2]
    oc, og = pl.pallas_call(
        functools.partial(_copy_kernel, scale=1.0 / math.sqrt(D), d=D),
        out_shape=(jax.ShapeDtypeStruct((B, T, 1), DTYPE),
                   jax.ShapeDtypeStruct((B, T, 1), DTYPE)),
        grid=(B,),
        in_specs=[
            pl.BlockSpec((1, T, D1), lambda b: (b, 0, 0)),
            pl.BlockSpec((1, S, D), lambda b: (b, 0, 0)),
            pl.BlockSpec((1, 1, S), lambda b: (b, 0, 0)),
            pl.BlockSpec((1, T, S), lambda b: (b, 0, 0)),
        ],
        out_specs=[pl.BlockSpec((1, T, 1), lambda b: (b, 0, 0)),
                   pl.BlockSpec((1, T, 1), lambda b: (b, 0, 0))],
        compiler_params=pltpu.CompilerParams(dimension_semantics=("parallel",),
                                             vmem_limit_bytes=_VMEM_LIMIT),
    )(cg, memory_bf, key_i8, idx_i8)
    return oc[:, :, 0], og[:, :, 0]


# ----------------------------------------------------------------------------
# Fused vocab projection + online softmax + gold-token gather (never builds (B,T,V))
# ----------------------------------------------------------------------------
def _gen_gold_prob_kernel(gold_ref, x_ref, w_ref, b_ref, o_ref, m_sc, l_sc, g_sc,
                          *, tv, v_real):
    j = pl.program_id(1)

    @pl.when(j == 0)
    def _():
        m_sc[...] = jnp.full_like(m_sc, NEG_BIG)
        l_sc[...] = jnp.zeros_like(l_sc)
        g_sc[...] = jnp.zeros_like(g_sc)

    logits = jnp.dot(x_ref[...].astype(BF16), w_ref[...],
                     preferred_element_type=jnp.float32) + b_ref[...]
    col = jax.lax.broadcasted_iota(jnp.int32, logits.shape, 1) + j * tv
    logits = jnp.where(col < v_real, logits, NEG_BIG)       # mask padded vocab columns
    hit = col == gold_ref[...]
    g_sc[...] += jnp.sum(jnp.where(hit, logits, 0.0), axis=-1, keepdims=True)

    m_prev = m_sc[...]
    m_new = jnp.maximum(m_prev, jnp.max(logits, axis=-1, keepdims=True))
    l_sc[...] = l_sc[...] * jnp.exp(m_prev - m_new) + \
        jnp.sum(jnp.exp(logits - m_new), axis=-1, keepdims=True)
    m_sc[...] = m_new

    @pl.when(j == pl.num_programs(1) - 1)
    def _():
        # exact division (feeds jnp.log downstream)
        o_ref[...] = (jnp.exp(g_sc[...] - m_sc[...]) / l_sc[...]).astype(o_ref.dtype)


def gen_gold_prob(x, w, b, gold):
    """softmax(x @ w + b)[gold] without materializing the (B,T,V) softmax."""
    B, T, D = x.shape
    V = w.shape[1]
    M = B * T
    x2 = x.reshape(M, D)
    gold2 = gold.reshape(M, 1).astype(jnp.int32)

    tm, Mp = _tile(M, 512)
    tv, Vp = _tile(V, 1024)
    x2 = _pad2(x2, Mp, D)
    gold2 = _pad2(gold2, Mp, 1)
    wp = _pad2(w, D, Vp).astype(BF16)
    bp = _pad2(b.reshape(1, V), 1, Vp)

    out = pl.pallas_call(
        functools.partial(_gen_gold_prob_kernel, tv=tv, v_real=V),
        out_shape=jax.ShapeDtypeStruct((Mp, 1), DTYPE),
        grid=(Mp // tm, Vp // tv),
        in_specs=[
            pl.BlockSpec((tm, 1), lambda i, j: (i, 0)),
            pl.BlockSpec((tm, D), lambda i, j: (i, 0)),
            pl.BlockSpec((D, tv), lambda i, j: (0, j)),
            pl.BlockSpec((1, tv), lambda i, j: (0, j)),
        ],
        out_specs=pl.BlockSpec((tm, 1), lambda i, j: (i, 0)),
        scratch_shapes=[pltpu.VMEM((tm, 1), jnp.float32)] * 3,
        compiler_params=pltpu.CompilerParams(
            dimension_semantics=("parallel", "arbitrary"),
            vmem_limit_bytes=_VMEM_LIMIT),
    )(gold2, x2, wp, bp)
    return out[:M, 0].reshape(B, T)


# ----------------------------------------------------------------------------
# Model pieces (glue around the Pallas kernels)
# ----------------------------------------------------------------------------
def encoder_forward(params, src_ids, adjacency, src_lengths):
    """HGT-style encoder over 'subtoken' nodes (single-relation degenerate form)."""
    nhead = params["nhead"]
    h = jnp.take(params["enc_emb"], src_ids, axis=0)             # (B, S, D) f32
    B, S, _ = h.shape
    key_valid = jnp.arange(S)[None, :] < src_lengths[:, None]    # (B, S) bool
    adj_i8 = (adjacency.astype(jnp.bool_) & key_valid[:, None, :]).astype(jnp.int8)
    key_i8 = key_valid[:, None, :].astype(jnp.int8)              # (B, 1, S)

    for lyr in params["enc_layers"]:
        qkv = linear(h, lyr["attn"]["wqkv"], lyr["attn"]["bqkv"], out_dtype=BF16)
        att = flash_self_attention(qkv, nhead, mask_i8=adj_i8)
        msg = linear(att, lyr["attn"]["wo"], lyr["attn"]["bo"], act="gelu")
        trans = linear(msg, lyr["wa"], lyr["ba"])
        alpha = jax.nn.sigmoid(lyr["skip"])
        # gated skip fused into the LayerNorm kernel
        h = add_layer_norm(trans, h, lyr["ln_g"], lyr["ln_b"],
                           coef_x=alpha, coef_y=1.0 - alpha)
    return h, key_i8


def decoder_forward(params, tgt_inputs, memory, key_i8, copy_idx_i8, gen_mask):
    """CopyDecoderTransformer forward: per-token log-probs and per-example scores."""
    nhead = params["nhead"]
    B, T_full = tgt_inputs.shape
    dec_in = tgt_inputs[:, :-1]
    gold = tgt_inputs[:, 1:]
    T = T_full - 1
    D = params["dec_emb"].shape[1]

    x = jnp.take(params["dec_emb"], dec_in, axis=0) * math.sqrt(D) + params["pe"][:T][None]
    memory_bf = memory.astype(BF16)            # one cast, reused by every decoder layer

    for lyr in params["dec_layers"]:
        qkv = linear(x, lyr["self"]["wqkv"], lyr["self"]["bqkv"], out_dtype=BF16)
        sa = flash_self_attention(qkv, nhead, causal=True)       # causal mask built in-kernel
        sa = linear(sa, lyr["self"]["wo"], lyr["self"]["bo"])
        x = add_layer_norm(x, sa, lyr["ln1_g"], lyr["ln1_b"])

        q = linear(x, lyr["cross"]["wq"], lyr["cross"]["bq"], out_dtype=BF16)
        kv = linear(memory_bf, lyr["cross"]["wkv"], lyr["cross"]["bkv"], out_dtype=BF16)
        ca = flash_cross_attention(q, kv, key_i8, nhead)
        ca = linear(ca, lyr["cross"]["wo"], lyr["cross"]["bo"])
        x = add_layer_norm(x, ca, lyr["ln2_g"], lyr["ln2_b"])

        ff = ffn(x, lyr["w1"], lyr["b1"], lyr["w2"], lyr["b2"])
        x = add_layer_norm(x, ff, lyr["ln3_g"], lyr["ln3_b"])

    # --- pointer-generator head ---
    gold_gen_prob = gen_gold_prob(x, params["w_read"], params["b_read"], gold)   # (B, T)

    # copy projection + copy gate folded into one lane-dense matmul (no N=1 matmul)
    w_cg = jnp.concatenate([params["w_copy"], params["w_gate"]], axis=1)         # (D, D+1)
    b_cg = jnp.concatenate([params["b_copy"], params["b_gate"]])
    cg = linear(x, w_cg, b_cg)                                                   # (B, T, D+1)
    copy_contrib, p_copy = copy_attention(cg, memory_bf, key_i8, copy_idx_i8)    # (B, T) each

    prob = (1.0 - p_copy) * gold_gen_prob * gen_mask + copy_contrib
    tgt_pad = (gold != 0).astype(DTYPE)
    log_prob = jnp.log(prob + 1e-9) * tgt_pad
    return log_prob, jnp.sum(log_prob, axis=-1)


def model_forward(params, src_ids, adjacency, src_lengths, tgt_inputs,
                  tgt_token_copy_idx_mask, tgt_token_gen_mask):
    memory, key_i8 = encoder_forward(params, src_ids, adjacency, src_lengths)
    copy_idx_i8 = (tgt_token_copy_idx_mask != 0).astype(jnp.int8)
    return decoder_forward(params, tgt_inputs, memory, key_i8,
                           copy_idx_i8, tgt_token_gen_mask)


# ----------------------------------------------------------------------------
# Deterministic parameter initialization (matches _init_weights: N(0, 0.02), zero bias,
# LayerNorm gamma=1 / beta=0, embedding padding_idx row zeroed).
# ----------------------------------------------------------------------------
def sinusoidal_pe(max_len, d):
    pos = jnp.arange(max_len)[:, None].astype(jnp.float32)
    i = jnp.arange(0, d, 2).astype(jnp.float32)
    div = jnp.exp(-math.log(10000.0) * i / d)
    pe = jnp.zeros((max_len, d), dtype=DTYPE)
    pe = pe.at[:, 0::2].set(jnp.sin(pos * div))
    pe = pe.at[:, 1::2].set(jnp.cos(pos * div))
    return pe


def init_params(key, *, src_vocab, tgt_vocab, d, ff, nhead, enc_layers, dec_layers, max_len):
    keys = iter(jax.random.split(key, 512))

    def nrm(shape):
        return jax.random.normal(next(keys), shape, dtype=DTYPE) * 0.02

    def z(*shape):
        return jnp.zeros(shape, DTYPE)

    def self_attn_params():
        return {"wqkv": nrm((d, 3 * d)), "bqkv": z(3 * d),
                "wo": nrm((d, d)), "bo": z(d)}

    def cross_attn_params():
        return {"wq": nrm((d, d)), "bq": z(d),
                "wkv": nrm((d, 2 * d)), "bkv": z(2 * d),
                "wo": nrm((d, d)), "bo": z(d)}

    enc_emb = nrm((src_vocab, d)).at[0].set(0.0)
    dec_emb = nrm((tgt_vocab, d)).at[0].set(0.0)

    params = {
        "nhead": nhead,
        "enc_emb": enc_emb,
        "dec_emb": dec_emb,
        "pe": sinusoidal_pe(max_len, d),
        "enc_layers": [
            {
                "attn": self_attn_params(),
                "wa": nrm((d, d)), "ba": z(d),
                "skip": jnp.ones((), DTYPE),
                "ln_g": jnp.ones((d,), DTYPE), "ln_b": z(d),
            }
            for _ in range(enc_layers)
        ],
        "dec_layers": [
            {
                "self": self_attn_params(),
                "cross": cross_attn_params(),
                "w1": nrm((d, ff)), "b1": z(ff),
                "w2": nrm((ff, d)), "b2": z(d),
                "ln1_g": jnp.ones((d,), DTYPE), "ln1_b": z(d),
                "ln2_g": jnp.ones((d,), DTYPE), "ln2_b": z(d),
                "ln3_g": jnp.ones((d,), DTYPE), "ln3_b": z(d),
            }
            for _ in range(dec_layers)
        ],
        "w_read": nrm((d, tgt_vocab)), "b_read": z(tgt_vocab),
        "w_copy": nrm((d, d)), "b_copy": z(d),
        "w_gate": nrm((d, 1)), "b_gate": z(1),
    }
    return params


# ----------------------------------------------------------------------------
if __name__ == "__main__":
    key = jax.random.PRNGKey(0)
    k_par, k1, k2, k3, k4 = jax.random.split(key, 5)

    # small shapes consistent with the module's forward (D kept at 128 so the fused
    # qkv/kv projections can be viewed with 128-lane-aligned blocks; module default is 256)
    B, S, T = 2, 12, 9           # S = #subtoken nodes per graph (padded), T = tgt len (+boundary)
    D, FF, NHEAD = 128, 256, 4
    ENC_L, DEC_L = 2, 2
    SRC_V, TGT_V = 40, 50
    MAX_LEN = 64

    params = init_params(
        k_par, src_vocab=SRC_V, tgt_vocab=TGT_V, d=D, ff=FF, nhead=NHEAD,
        enc_layers=ENC_L, dec_layers=DEC_L, max_len=MAX_LEN,
    )

    # synthetic graph/sequence inputs (replacing the DGL batched heterograph)
    src_ids = jax.random.randint(k1, (B, S), 1, SRC_V)
    src_lengths = jnp.array([S, S - 3], dtype=jnp.int32)        # subtoken_nums
    adj = (jax.random.uniform(k2, (B, S, S)) < 0.3)
    adj = adj | jnp.transpose(adj, (0, 2, 1)) | jnp.eye(S, dtype=bool)[None]

    tgt_inputs = jax.random.randint(k3, (B, T), 1, TGT_V)        # boundary-sym appended targets
    T_out = T - 1
    # tgt_token_copy_idx_mask: (B, T_out, S) — which src positions match each gold tgt token
    copy_idx_mask = (jax.random.uniform(k4, (B, T_out, S)) < 0.2)
    copy_idx_mask = copy_idx_mask & (jnp.arange(S)[None, None, :] < src_lengths[:, None, None])
    # tgt_token_gen_mask: (B, T_out) — token is generatable from tgt vocab
    gen_mask = jnp.ones((B, T_out), dtype=DTYPE)

    log_probs, scores = model_forward(
        params, src_ids, adj, src_lengths, tgt_inputs, copy_idx_mask, gen_mask
    )
    jax.block_until_ready((log_probs, scores))
    assert log_probs.shape == (B, T_out) and scores.shape == (B,)
    assert bool(jnp.all(jnp.isfinite(log_probs)))
    print("KERNEL_OK")
</pallas_src>

<mosaic_0001>
module attributes {stable_mosaic.version = 11 : i64} {
  func.func @_linear_kernel(%arg0: i32, %arg1: i32, %arg2: i32, %arg3: memref<24x128xf32, #tpu.memory_space<vmem>>, %arg4: memref<128x384xbf16, #tpu.memory_space<vmem>>, %arg5: memref<1x384xf32, #tpu.memory_space<vmem>>, %arg6: memref<24x384xbf16, #tpu.memory_space<vmem>>, %arg7: memref<24x384xf32, #tpu.memory_space<vmem>>) attributes {dimension_semantics = [#tpu.dimension_semantics<parallel>, #tpu.dimension_semantics<parallel>, #tpu.dimension_semantics<arbitrary>], iteration_bounds = array<i64: 1, 1, 1>, scalar_prefetch = 0 : i64, scratch_operands = 1 : i64, tpu.core_type = #tpu.core_type<tc>, window_params = [{transform_indices = @transform_0, window_bounds = array<i64: 24, 128>}, {transform_indices = @transform_1, window_bounds = array<i64: 128, 384>}, {transform_indices = @transform_2, window_bounds = array<i64: 1, 384>}, {transform_indices = @transform_3, window_bounds = array<i64: 24, 384>}]} {
    %c0_i32 = arith.constant 0 : i32
    %0 = arith.cmpi eq, %arg2, %c0_i32 : i32
    %1 = arith.extui %0 : i1 to i32
    %c0_i32_0 = arith.constant 0 : i32
    %2 = arith.cmpi ne, %1, %c0_i32_0 : i32
    scf.if %2 {
      %cst_10 = arith.constant 0.000000e+00 : f32
      %13 = vector.broadcast %cst_10 : f32 to vector<24x384xf32>
      %c0_11 = arith.constant 0 : index
      %c0_12 = arith.constant 0 : index
      %14 = vector.load %arg7[%c0_11, %c0_12] : memref<24x384xf32, #tpu.memory_space<vmem>>, vector<24x384xf32>
      tpu.vector_store %arg7[%c0_11, %c0_12], %13 {strides = array<i32>} : memref<24x384xf32, #tpu.memory_space<vmem>>, vector<24x384xf32>,
    } else {
    }
    %c0 = arith.constant 0 : index
    %c0_1 = arith.constant 0 : index
    %3 = vector.load %arg7[%c0, %c0_1] : memref<24x384xf32, #tpu.memory_space<vmem>>, vector<24x384xf32>
    %c0_2 = arith.constant 0 : index
    %c0_3 = arith.constant 0 : index
    %4 = vector.load %arg3[%c0_2, %c0_3] : memref<24x128xf32, #tpu.memory_space<vmem>>, vector<24x128xf32>
    %5 = arith.truncf %4 : vector<24x128xf32> to vector<24x128xbf16>
    %c0_4 = arith.constant 0 : index
    %c0_5 = arith.constant 0 : index
    %6 = vector.load %arg4[%c0_4, %c0_5] : memref<128x384xbf16, #tpu.memory_space<vmem>>, vector<128x384xbf16>
    %cst = arith.constant dense<0.000000e+00> : vector<24x384xf32>
    %7 = tpu.matmul %5, %6, %cst {dimension_numbers = #tpu.dot_dimension_numbers<[1], [0], [0], [1], [0, 0, 1, 1], [], []>} : vector<24x128xbf16>, vector<128x384xbf16>, vector<24x384xf32> -> vector<24x384xf32>
    %8 = arith.addf %3, %7 : vector<24x384xf32>
    %c0_6 = arith.constant 0 : index
    %c0_7 = arith.constant 0 : index
    %9 = vector.load %arg7[%c0_6, %c0_7] : memref<24x384xf32, #tpu.memory_space<vmem>>, vector<24x384xf32>
    tpu.vector_store %arg7[%c0_6, %c0_7], %8 {strides = array<i32>} : memref<24x384xf32, #tpu.memory_space<vmem>>, vector<24x384xf32>,
    %c0_i32_8 = arith.constant 0 : i32
    %10 = arith.cmpi eq, %arg2, %c0_i32_8 : i32
    %11 = arith.extui %10 : i1 to i32
    %c0_i32_9 = arith.constant 0 : i32
    %12 = arith.cmpi ne, %11, %c0_i32_9 : i32
    scf.if %12 {
      %c0_10 = arith.constant 0 : index
      %c0_11 = arith.constant 0 : index
      %13 = vector.load %arg7[%c0_10, %c0_11] : memref<24x384xf32, #tpu.memory_space<vmem>>, vector<24x384xf32>
      %c0_12 = arith.constant 0 : index
      %c0_13 = arith.constant 0 : index
      %14 = vector.load %arg5[%c0_12, %c0_13] : memref<1x384xf32, #tpu.memory_space<vmem>>, vector<1x384xf32>
      %15 = vector.broadcast %14 : vector<1x384xf32> to vector<24x384xf32>
      %16 = arith.addf %13, %15 : vector<24x384xf32>
      %17 = arith.truncf %16 : vector<24x384xf32> to vector<24x384xbf16>
      %c0_14 = arith.constant 0 : index
      %c0_15 = arith.constant 0 : index
      %18 = vector.load %arg6[%c0_14, %c0_15] : memref<24x384xbf16, #tpu.memory_space<vmem>>, vector<24x384xbf16>
      tpu.vector_store %arg6[%c0_14, %c0_15], %17 {strides = array<i32>} : memref<24x384xbf16, #tpu.memory_space<vmem>>, vector<24x384xbf16>,
    } else {
    }
    return
  }
  func.func @transform_0(%arg0: i32, %arg1: i32, %arg2: i32) -> (i32, i32) {
    %c0_i32 = arith.constant 0 : i32
    return %arg0, %arg2 : i32, i32
  }
  func.func @transform_1(%arg0: i32, %arg1: i32, %arg2: i32) -> (i32, i32) {
    %c0_i32 = arith.constant 0 : i32
    return %arg2, %arg1 : i32, i32
  }
  func.func @transform_2(%arg0: i32, %arg1: i32, %arg2: i32) -> (i32, i32) {
    %c0_i32 = arith.constant 0 : i32
    %c0_i32_0 = arith.constant 0 : i32
    return %c0_i32, %arg1 : i32, i32
  }
  func.func @transform_3(%arg0: i32, %arg1: i32, %arg2: i32) -> (i32, i32) {
    %c0_i32 = arith.constant 0 : i32
    return %arg0, %arg1 : i32, i32
  }
}

</mosaic_0001>

<bundles_post_ra>
// kernel: tpu_custom_call.1
= control target key start
LH: loop header
LB: loop body
LE: loop exit
PB: predicated region body
PF: predicated region fallthrough
CT: control target
= control target key end

     0   :  { %8 = vsyncpa [#allocation4], 0  ;;  %s663_s0 = inlined_call_operand.hbm [shape: f32[24,128], index: 0, kind: input, shape index: {}]   ;;  %s664_s1 = inlined_call_operand.hbm [shape: bf16[128,384], index: 1, kind: input, shape index: {}]   ;;  %s665_s2 = inlined_call_operand.vmem [shape: f32[1,384], index: 2, kind: input, shape index: {}]   ;;  %s666_s3 = inlined_call_operand.hbm [shape: bf16[24,384], index: 3, kind: output, shape index: {}]  }
   0x1   :  { %9 = vsyncpa [#allocation7], 0 }
   0x2   :  { %10 = vsyncpa [#allocation5], 0  ;;  %s615_s12 = smov [#allocation3]  }
   0x3   :  { %s16_s13 = sshll.u32 %s615_s12, 4  ;;  %s17_s13 = int_to_ptr.vmem [resolvable:$true] %s16_s13 }
   0x4   :  { %s557_s14 = scalar_lea.vmem %s17_s13, 384  ;;  %p562_p1 = scmp.lt.s32.totalorder %s17_s13, %s17_s13 }
   0x5   :  { %p558_p0 = scmp.ne.s32.totalorder %s17_s13, %s557_s14  ;;  %p563_p2 = scmp.lt.s32.totalorder %s557_s14, %s557_s14 }
   0x7   :  { %p564_p3 = por %p563_p2, %p562_p1 }
   0x9   :  { %p565_p4 = pnand %p564_p3, %p558_p0 }
   0xb   :  { %568 = shalt.err (!%p565_p4)
}
   0xc   :  { %s616_s15 = smov 128   ;;  %s617_s16 = smov 8  }
   0xd   :  { %22 = dma.hbm_to_vmem [thread:$0]  %s663_s0, 384, %s17_s13, [#allocation4], %s616_s15, %s616_s15, %s617_s16  }
   0xe   :  { %s618_s19 = smov [#allocation6]  }
   0xf   :  { %s28_s20 = sshll.u32 %s618_s19, 4  ;;  %s29_s20 = int_to_ptr.vmem [resolvable:$true] %s28_s20 }
  0x10   :  { %s577_s21 = scalar_lea.vmem %s29_s20, 3072  ;;  %p582_p6 = scmp.lt.s32.totalorder %s29_s20, %s29_s20 }
  0x11   :  { %p578_p5 = scmp.ne.s32.totalorder %s29_s20, %s577_s21  ;;  %p583_p7 = scmp.lt.s32.totalorder %s577_s21, %s577_s21 }
  0x13   :  { %p584_p8 = por %p583_p7, %p582_p6 }
  0x15   :  { %p585_p9 = pnand %p584_p8, %p578_p5 }
  0x17   :  { %588 = shalt.err (!%p585_p9)
}
  0x18   :  { %s619_s22 = smov 192   ;;  %s620_s23 = smov 12  }
  0x19   :  { %34 = dma.hbm_to_vmem [thread:$0]  %s664_s1, 3072, %s29_s20, [#allocation7], %s619_s22, %s619_s22, %s620_s23  }
  0x1a   :  { %609 = dma.done.wait [#allocation4], 384  }
  0x1b   :  { %610 = vsyncadd [#allocation4], 4294966912 }
  0x1c   :  { %611 = dma.done.wait [#allocation7], 3072  }
  0x1d   :  { %612 = vsyncadd [#allocation7], 4294964224  ;;  %v621_v0 = vmov 0   ;;  %v517_v1 = vld [vmem:[#allocation6 + $0xac] ss:$12 sps:$4 sm:$0xff]   ;;  %v67_v19 = vld [vmem:[#allocation3 + $0x8] sm:$0xff]  ;;  %v362_v30 = vlaneseq }
  0x1e   :  { %263 = vmatprep.mubr.bf16.mxu0 %v621_v0  ;;  %v519_v2 = vld [vmem:[#allocation6 + $0xb0] ss:$12 sps:$4 sm:$0xff]   ;;  %231 = vmatprep.subr.bf16.mxu0 %v517_v1  ;;  %v520_v3 = vld [vmem:[#allocation6 + $0xa8] ss:$12 sps:$4 sm:$0xff]   ;;  %v523_v5 = vld [vmem:[#allocation6 + $0x98] ss:$12 sps:$4 sm:$0xff]  }
  0x1f   :  { %489 = vmatprep.subr.bf16.mxu1 %v519_v2  ;;  %v521_v4 = vld [vmem:[#allocation6 + $0x94] ss:$12 sps:$4 sm:$0xff]   ;;  %232 = vmatpush1.bf16.msra.mxu0 %v520_v3  ;;  %v524_v6 = vld [vmem:[#allocation6 + $0x90] ss:$12 sps:$4 sm:$0xff]   ;;  %v528_v9 = vld [vmem:[#allocation6 + $0x78] ss:$12 sps:$4 sm:$0xff]  }
  0x20   :  { %490 = vmatpush3.bf16.msra.mxu1 %v519_v2  ;;  %233 = vmatprep.subr.bf16.mxu0 %v521_v4  ;;  %v525_v7 = vld [vmem:[#allocation6 + $0x7c] ss:$12 sps:$4 sm:$0xff]   ;;  %v527_v8 = vld [vmem:[#allocation6 + $0x80] ss:$12 sps:$4 sm:$0xff]   ;;  %v529_v10 = vld [vmem:[#allocation6 + $0x64] ss:$12 sps:$4 sm:$0xff]  }
  0x21   :  { %491 = vmatprep.subr.bf16.mxu1 %v523_v5  ;;  %v531_v11 = vld [vmem:[#allocation6 + $0x68] ss:$12 sps:$4 sm:$0xff]   ;;  %v532_v12 = vld [vmem:[#allocation6 + $0x60] ss:$12 sps:$4 sm:$0xff]   ;;  %v535_v14 = vld [vmem:[#allocation6 + $0x50] ss:$12 sps:$4 sm:$0xff]  }
  0x22   :  { %v533_v13 = vld [vmem:[#allocation6 + $0x4c] ss:$12 sps:$4 sm:$0xff]   ;;  %v536_v15 = vld [vmem:[#allocation6 + $0x48] ss:$12 sps:$4 sm:$0xff]   ;;  %v540_v20 = vld [vmem:[#allocation6 + $0x30] ss:$12 sps:$4 sm:$0xff]  }
  0x23   :  { %234 = vmatpush1.bf16.msra.mxu0 %v524_v6  ;;  %v537_v16 = vld [vmem:[#allocation6 + $0x34] ss:$12 sps:$4 sm:$0xff]   ;;  %v539_v17 = vld [vmem:[#allocation6 + $0x38] ss:$12 sps:$4 sm:$0xff]   ;;  %v66_v18 = vld [vmem:[#allocation3] sm:$0xff]  ;;  %v363_v31 = vshrl.u32 %v362_v30, 7 }
  0x24   :  { %492 = vmatpush3.bf16.msra.mxu1 %v523_v5  ;;  %235 = vmatprep.subr.bf16.mxu0 %v525_v7  ;;  %v69_v21 = vpack.c.bf16 %v67_v19, %v66_v18  ;;  %v541_v22 = vld [vmem:[#allocation6 + $0x1c] ss:$12 sps:$4 sm:$0xff]   ;;  %v543_v23 = vld [vmem:[#allocation6 + $0x20] ss:$12 sps:$4 sm:$0xff]   ;;  %v544_v24 = vld [vmem:[#allocation6 + $0x18] ss:$12 sps:$4 sm:$0xff]  }
  0x25   :  { %493 = vmatprep.subr.bf16.mxu1 %v527_v8  ;;  %v545_v25 = vld [vmem:[#allocation6 + $0x4] ss:$12 sps:$4 sm:$0xff]   ;;  %v547_v26 = vld [vmem:[#allocation6 + $0x8] ss:$12 sps:$4 sm:$0xff]   ;;  %v548_v27 = vld [vmem:[#allocation6] ss:$12 sps:$4 sm:$0xff]  }
  0x26   :  { %505 = vmatprep.mubr.bf16.mxu1 %v69_v21  ;;  %v68_v28 = vld [vmem:[#allocation3 + $0x10] sm:$0xff]  ;;  %v372_v32 = vsub.s32 2, %v363_v31  ;;  %v364_v33 = vsub.s32 0, %v363_v31  ;;  %v368_v34 = vsub.s32 1, %v363_v31  ;;  %v360_v35 = vld [vmem:[%s665_s2] sm:$0x7] }
  0x27   :  { %236 = vmatpush1.bf16.msra.mxu0 %v528_v9  ;;  %v70_v29 = vpack.c.bf16 %v68_v28, %v68_v28  ;;  %s622_s2 = smov [#allocation8]  }
  0x28   :  { %494 = vmatpush3.bf16.msra.mxu1 %v527_v8  ;;  %237 = vmatprep.subr.bf16.mxu0 %v529_v10  ;;  %v373_v36 = vrot.slane %v360_v35, %v372_v32  ;;  %v365_v37 = vrot.slane %v360_v35, %v364_v33  ;;  %v369_v38 = vrot.slane %v360_v35, %v368_v34  ;;  %s430_s26 = sshll.u32 %s622_s2, 4  ;;  %s431_s26 = int_to_ptr.vmem [resolvable:$true] %s430_s26 }
  0x29   :  { %495 = vmatprep.subr.bf16.mxu1 %v531_v11  ;;  %s589_s27 = scalar_lea.vmem %s431_s26, 576  ;;  %p594_p11 = scmp.lt.s32.totalorder %s431_s26, %s431_s26 }
  0x2a   :  { %p590_p10 = scmp.ne.s32.totalorder %s431_s26, %s589_s27  ;;  %p595_p12 = scmp.lt.s32.totalorder %s589_s27, %s589_s27 }
  0x2b   :  { %238 = vmatpush1.bf16.msra.mxu0 %v532_v12 }
  0x2c   :  { %496 = vmatpush3.bf16.msra.mxu1 %v531_v11  ;;  %239 = vmatprep.subr.bf16.mxu0 %v533_v13  ;;  %p596_p13 = por %p595_p12, %p594_p11 }
  0x2d   :  { %497 = vmatprep.subr.bf16.mxu1 %v535_v14 }
  0x2e   :  { %p597_p0 = pnand %p596_p13, %p590_p10 }
  0x2f   :  { %240 = vmatpush1.bf16.msra.mxu0 %v536_v15 }
  0x30   :  { %498 = vmatpush3.bf16.msra.mxu1 %v535_v14  ;;  %241 = vmatprep.subr.bf16.mxu0 %v537_v16 }
  0x31   :  { %499 = vmatprep.subr.bf16.mxu1 %v539_v17 }
  0x33   :  { %242 = vmatpush1.bf16.msra.mxu0 %v540_v20 }
  0x34   :  { %500 = vmatpush3.bf16.msra.mxu1 %v539_v17  ;;  %243 = vmatprep.subr.bf16.mxu0 %v541_v22 }
  0x35   :  { %501 = vmatprep.subr.bf16.mxu1 %v543_v23 }
  0x37   :  { %244 = vmatpush1.bf16.msra.mxu0 %v544_v24 }
  0x38   :  { %502 = vmatpush3.bf16.msra.mxu1 %v543_v23  ;;  %245 = vmatprep.subr.bf16.mxu0 %v545_v25 }
  0x39   :  { %503 = vmatprep.subr.bf16.mxu1 %v547_v26 }
  0x3b   :  { %246 = vmatpush1.bf16.msra.mxu0 %v548_v27 }
  0x3c   :  { %504 = vmatpush3.bf16.msra.mxu1 %v547_v26 }
  0x3e   :  { %264 = vmatmul.mubr.bf16.vlgmr.msra.gmra.mxu0 %v69_v21 }
  0x3f   :  { %506 = vmatmul.mubr.bf16.vlgmr.msra.gmra.mxu1 %v70_v29  ;;  %273 = vmatprep.mubr.bf16.mxu0 %v621_v0 }
  0x46   :  { %274 = vmatmul.mubr.bf16.gmra.mxu0 %v70_v29 }
  0xfe   :  { %v265_v39 = vpop.f32.mrf.mxu0 }
  0xff   :  { %v507_v40 = vpop.f32.mrf.mxu1  ;;  %v377_v44 = vadd.f32 %v365_v37, %v265_v39 }
 0x100   :  { %v385_v41 = vadd.f32 %v507_v40, %v373_v36  ;;  %v267_v42 = vpop.f32.mrf.mxu0 }
 0x101   :  { %v316_v43 = vpop.f32.mrf.mxu1  ;;  %v378_v46 = vadd.f32 %v369_v38, %v267_v42 }
 0x102   :  { %v478_v45 = vpack.c.bf16 %v385_v41, %v385_v41  ;;  %v379_v47 = vadd.f32 %v373_v36, %v316_v43  ;;  %v269_v48 = vpop.f32.mrf.mxu0 }
 0x103   :  { %v508_v49 = vpop.f32.mrf.mxu1  ;;  %v473_v50 = vpack.c.bf16 %v378_v46, %v377_v44  ;;  %v380_v54 = vadd.f32 %v365_v37, %v269_v48 }
 0x104   :  { %424 = vst [vmem:[#allocation8 + $0x20] sm:$0xf] %v478_v45  ;;  %v474_v51 = vpack.c.bf16 %v379_v47, %v379_v47  ;;  %v271_v52 = vpop.f32.mrf.mxu0 }
 0x105   :  { %v319_v53 = vpop.f32.mrf.mxu1  ;;  %419 = vst [vmem:[#allocation8] sm:$0xff] %v473_v50  ;;  %v381_v55 = vadd.f32 %v369_v38, %v271_v52 }
 0x106   :  { %420 = vst [vmem:[#allocation8 + $0x8] sm:$0xf] %v474_v51  ;;  %v382_v56 = vadd.f32 %v373_v36, %v319_v53  ;;  %v275_v57 = vpop.f32.mrf.mxu0 }
 0x107   :  { %v475_v58 = vpack.c.bf16 %v381_v55, %v380_v54  ;;  %v383_v61 = vadd.f32 %v365_v37, %v275_v57 }
 0x108   :  { %v476_v59 = vpack.c.bf16 %v382_v56, %v382_v56  ;;  %v277_v60 = vpop.f32.mrf.mxu0 }
 0x109   :  { %421 = vst [vmem:[#allocation8 + $0xc] sm:$0xff] %v475_v58  ;;  %v384_v62 = vadd.f32 %v369_v38, %v277_v60 }
 0x10a   :  { %422 = vst [vmem:[#allocation8 + $0x14] sm:$0xf] %v476_v59  ;;  %v279_v63 = vpop.f32.mrf.mxu0 }
 0x10b   :  { %v477_v0 = vpack.c.bf16 %v384_v62, %v383_v61 }
 0x10c   :  { %v280_v1 = vpop.f32.mrf.mxu0 }
 0x10d   :  { %423 = vst [vmem:[#allocation8 + $0x18] sm:$0xff] %v477_v0 }
 0x10e   :  { %600 = shalt.err (!%p597_p0)
}
 0x10f   :  { %436 = dma.vmem_to_hbm [thread:$0]  %s431_s26, 576, %s666_s3, [#allocation5], %s619_s22, %s619_s22, %s620_s23  }
 0x110   :  { %613 = dma.done.wait [#allocation5], 576  }
 0x111   :  { %614 = vsyncadd [#allocation5], 4294966720 }
 0x112   :  { %440 = vsyncpa [#allocation4], 1 }
 0x113   :  { %441 = vsyncpa [#allocation7], 1 }
 0x114   :  { %442 = vsyncpa [#allocation5], 1 }

</bundles_post_ra>
